<compile_context>
chip_gen: v7x
topology: tpu7x:2x2x1
jax: 0.10.0
libtpu: 0.0.40
codegen_flags: <defaults>
</compile_context>

<pallas_src>
import jax
import jax.numpy as jnp
import numpy as np
from jax.experimental import pallas as pl
from jax.experimental.pallas import tpu as pltpu

# ---- KAN spline configuration (grid=3, k=3, grid_range=[-1, 1]) ----
GRID = 3
K = 3
NUM_BASIS = GRID + K                      # 6 spline coefficients per edge
_H = 2.0 / GRID                           # uniform knot spacing
_T0 = -1.0 - K * _H                       # first extended knot (= -3.0)
_INV_H = 1.0 / _H
KNOTS = [_T0 + i * _H for i in range(GRID + 2 * K + 1)]   # used by the reference

SUBLANE = 8
LANE = 128

# Set to jnp.bfloat16 on v6e/v7x for ~2x MXU throughput (f32 accumulation kept
# via preferred_element_type); re-validate with ~1e-2 tolerance if enabled.
MATMUL_DTYPE = jnp.float32


def _ceil_to(v, m):
    return ((v + m - 1) // m) * m


# ------------------------------ kernel math ------------------------------
def _sigmoid(z):
    # 0.5*(1+tanh(z/2)) == 1/(1+exp(-z)); tanh runs on the EUP (no VPU divide).
    return 0.5 * jnp.tanh(0.5 * z) + 0.5


def _bspline_basis(x):
    """The 6 uniform cubic B-spline basis values, closed form (no divides).

    Equivalent to Cox-de-Boor with half-open intervals on the uniform extended
    knot grid: B_c(x) = N3((x - t_c)/h), zero outside [t_c, t_{c+4}).
    x: (D, TB) f32 -> list of 6 arrays (D, TB).
    """
    v = (x - _T0) * _INV_H                # position in knot units
    j = jnp.floor(v)                      # segment index (integer-valued float)
    r = v - j                             # fractional offset in [0, 1)
    r2 = r * r
    r3 = r2 * r
    sixth = 1.0 / 6.0
    q = (r3 * sixth,
         (-3.0 * r3 + 3.0 * r2 + 3.0 * r + 1.0) * sixth,
         (3.0 * r3 - 6.0 * r2 + 4.0) * sixth,
         (-r3 + 3.0 * r2 - 3.0 * r + 1.0) * sixth)
    # Basis c uses piece m iff j == c + m; c+m spans only 9 distinct values, so
    # compute the indicators once and share them across all 6 bases.
    ind = [j == float(s) for s in range(NUM_BASIS + 3)]
    zero = jnp.zeros_like(x)
    out = []
    for c in range(NUM_BASIS):
        b = zero
        for m in range(4):
            b = jnp.where(ind[c + m], q[m], b)
        out.append(b)
    return out


def _make_fused_kernel(num_kan_layers):
    """One kernel evaluating the whole KAN stack + sigmoid on a batch tile."""

    def kernel(x_ref, *rest):
        w_refs = rest[:num_kan_layers]
        o_ref = rest[num_kan_layers]

        h = x_ref[...].astype(jnp.float32)                    # (D0p, TB) batch-on-lanes
        for w_ref in w_refs:
            w = w_ref[...]                                    # (Doutp, 7*Dinp), MATMUL_DTYPE
            # Fused operand: [silu(h); B0(h); ...; B5(h)]  -> (7*Dinp, TB).
            # Each chunk is a multiple of 8 sublanes -> tile-aligned concat.
            phi = jnp.concatenate([h * _sigmoid(h)] + _bspline_basis(h), axis=0)
            h = jnp.dot(w, phi.astype(w.dtype),
                        preferred_element_type=jnp.float32)   # (Doutp, TB)

        o_ref[...] = _sigmoid(h).astype(o_ref.dtype)          # (1, TB) lane-dense

    return kernel


# --------------------------- weight preparation ---------------------------
def prepare_fused_weights(params):
    """Per layer: zero-pad Din/Dout to multiples of 8 and fuse base + spline
    weights into one transposed matrix (Dout_p, 7*Din_p), matching the kernel's
    phi row order [silu rows | B0 rows | ... | B5 rows]. Padding is exact:
    padded features are 0 and their weight rows/columns are 0. Weights are
    pre-cast to MATMUL_DTYPE so the kernel never re-casts them per tile."""
    fused = []
    n = len(params)
    for li, (w_base, w_sp) in enumerate(params):
        din, dout = w_base.shape
        din_p = _ceil_to(din, SUBLANE)
        dout_p = 1 if li == n - 1 else _ceil_to(dout, SUBLANE)
        wb = jnp.zeros((din_p, dout_p), jnp.float32).at[:din, :dout].set(w_base)
        wsp = jnp.zeros((NUM_BASIS, din_p, dout_p), jnp.float32).at[:, :din, :dout].set(w_sp)
        w = jnp.concatenate([wb, wsp.reshape(NUM_BASIS * din_p, dout_p)], axis=0)
        fused.append(jnp.transpose(w).astype(MATMUL_DTYPE))   # (Dout_p, 7*Din_p)
    return fused


# ------------------------------ forward pass ------------------------------
def kan_score_forward(params, x, *, batch_tile=128):
    """kan_score forward: KAN(x) -> sigmoid -> squeeze(-1). x: (N, in_ch) -> (N,).

    batch_tile must be a multiple of 128; it can be raised to 512/1024 for large
    N — the per-tile VMEM footprint is only a few MiB even at 1024, well within
    v7x's 64 MiB budget."""
    n, din = x.shape
    fused_w = prepare_fused_weights(params)
    din_p = fused_w[0].shape[1] // (NUM_BASIS + 1)
    n_p = _ceil_to(max(n, batch_tile), batch_tile)

    # Batch on the lane axis: (Din_p, N_p), zero padded (padded rows/cols are exact).
    x_t = jnp.zeros((din_p, n_p), jnp.float32).at[:din, :n].set(
        jnp.transpose(x).astype(jnp.float32))

    num_layers = len(fused_w)
    kernel = _make_fused_kernel(num_layers)

    in_specs = [pl.BlockSpec((din_p, batch_tile), lambda i: (0, i))]
    for w in fused_w:
        # Weights are a few KiB: constant index_map keeps them VMEM-resident
        # across batch tiles (no per-tile re-DMA).
        in_specs.append(pl.BlockSpec(w.shape, lambda i: (0, 0)))

    # Advisory cost estimate for XLA scheduling around the custom call.
    flops = 0
    transcendentals = n_p                                   # final sigmoid
    bytes_accessed = x_t.size * 4 + n_p * 4
    for w in fused_w:
        dout_p, k7 = w.shape
        din_p_l = k7 // (NUM_BASIS + 1)
        flops += 2 * dout_p * k7 * n_p
        transcendentals += din_p_l * n_p                    # one tanh per SiLU element
        bytes_accessed += w.size * w.dtype.itemsize
    cost = pl.CostEstimate(flops=int(flops),
                           transcendentals=int(transcendentals),
                           bytes_accessed=int(bytes_accessed))

    out = pl.pallas_call(
        kernel,
        out_shape=jax.ShapeDtypeStruct((1, n_p), jnp.float32),
        grid=(n_p // batch_tile,),
        in_specs=in_specs,
        out_specs=pl.BlockSpec((1, batch_tile), lambda i: (0, i)),
        compiler_params=pltpu.CompilerParams(
            dimension_semantics=("parallel",),
            vmem_limit_bytes=64 * 1024 * 1024,
        ),
        cost_estimate=cost,
    )(x_t, *fused_w)
    return out[0, :n]                                         # (N,)


# ---------------- pure-JAX reference (Cox-de-Boor, for validation) ----------------
def _kan_layer_ref(x, w_base, w_sp, apply_sigmoid=False):
    x = x.astype(jnp.float32)
    acc = (x * jax.nn.sigmoid(x)) @ w_base
    t = KNOTS
    b = [jnp.where((x >= t[i]) & (x < t[i + 1]), 1.0, 0.0) for i in range(len(t) - 1)]
    for d in range(1, K + 1):
        b = [((x - t[i]) / (t[i + d] - t[i])) * b[i]
             + ((t[i + d + 1] - x) / (t[i + d + 1] - t[i + 1])) * b[i + 1]
             for i in range(len(b) - 1)]
    for c in range(NUM_BASIS):
        acc = acc + b[c] @ w_sp[c]
    if apply_sigmoid:
        acc = jax.nn.sigmoid(acc)
    return acc


def kan_score_forward_ref(params, x):
    h = x
    for l, (w_base, w_sp) in enumerate(params):
        h = _kan_layer_ref(h, w_base, w_sp, apply_sigmoid=(l == len(params) - 1))
    return jnp.squeeze(h, axis=-1)


# ---------------- parameter construction (deterministic) ----------------
def init_kan_score_params(key, in_channels, hidden_channels, num_layers):
    # width = [in] + [hidden]*(num_layers-2) + [1]  -> (num_layers-1) KAN layers
    width = [in_channels] + [hidden_channels] * (num_layers - 2) + [1]
    params = []
    for l in range(len(width) - 1):
        din, dout = width[l], width[l + 1]
        key, k1, k2 = jax.random.split(key, 3)
        w_base = (1.0 / np.sqrt(din)) + 0.1 * jax.random.normal(k1, (din, dout), jnp.float32)
        # spline coefficients (scale_sp=1 folded in), small init like pykan's noise init
        w_sp = 0.1 * jax.random.normal(k2, (NUM_BASIS, din, dout), jnp.float32)
        params.append((w_base, w_sp))
    return params


if __name__ == "__main__":
    key = jax.random.PRNGKey(0)
    N, in_channels, hidden_channels, num_layers = 256, 4, 32, 3

    key, kx, kp = jax.random.split(key, 3)
    # inputs roughly in the spline grid range [-1, 1]
    x = jax.random.uniform(kx, (N, in_channels), jnp.float32, minval=-1.0, maxval=1.0)
    params = init_kan_score_params(kp, in_channels, hidden_channels, num_layers)

    out = jax.block_until_ready(kan_score_forward(params, x, batch_tile=128))
    ref = jax.block_until_ready(kan_score_forward_ref(params, x))

    assert out.shape == (N,), out.shape
    np.testing.assert_allclose(np.asarray(out), np.asarray(ref), rtol=1e-4, atol=1e-4)

    print("KERNEL_OK")
</pallas_src>

<mosaic_0001>
module attributes {stable_mosaic.version = 11 : i64} {
  func.func @kernel(%arg0: i32, %arg1: memref<8x128xf32, #tpu.memory_space<vmem>>, %arg2: memref<32x56xf32, #tpu.memory_space<vmem>>, %arg3: memref<1x224xf32, #tpu.memory_space<vmem>>, %arg4: memref<1x128xf32, #tpu.memory_space<vmem>>) attributes {dimension_semantics = [#tpu.dimension_semantics<parallel>], iteration_bounds = array<i64: 2>, scalar_prefetch = 0 : i64, scratch_operands = 0 : i64, tpu.core_type = #tpu.core_type<tc>, window_params = [{transform_indices = @transform_0, window_bounds = array<i64: 8, 128>}, {pipeline_mode = #tpu.pipeline_mode<synchronous>, transform_indices = @transform_1, window_bounds = array<i64: 32, 56>}, {pipeline_mode = #tpu.pipeline_mode<synchronous>, transform_indices = @transform_2, window_bounds = array<i64: 1, 224>}, {transform_indices = @transform_3, window_bounds = array<i64: 1, 128>}]} {
    %c0 = arith.constant 0 : index
    %c0_0 = arith.constant 0 : index
    %0 = vector.load %arg1[%c0, %c0_0] : memref<8x128xf32, #tpu.memory_space<vmem>>, vector<8x128xf32>
    %c0_1 = arith.constant 0 : index
    %c0_2 = arith.constant 0 : index
    %1 = vector.load %arg2[%c0_1, %c0_2] : memref<32x56xf32, #tpu.memory_space<vmem>>, vector<32x56xf32>
    %cst = arith.constant 5.000000e-01 : f32
    %2 = vector.broadcast %cst : f32 to vector<8x128xf32>
    %3 = arith.mulf %2, %0 : vector<8x128xf32>
    %4 = math.tanh %3 : vector<8x128xf32>
    %cst_3 = arith.constant 5.000000e-01 : f32
    %5 = vector.broadcast %cst_3 : f32 to vector<8x128xf32>
    %6 = arith.mulf %5, %4 : vector<8x128xf32>
    %cst_4 = arith.constant 5.000000e-01 : f32
    %7 = vector.broadcast %cst_4 : f32 to vector<8x128xf32>
    %8 = arith.addf %6, %7 : vector<8x128xf32>
    %9 = arith.mulf %0, %8 : vector<8x128xf32>
    %cst_5 = arith.constant -3.000000e+00 : f32
    %10 = vector.broadcast %cst_5 : f32 to vector<8x128xf32>
    %11 = arith.subf %0, %10 : vector<8x128xf32>
    %cst_6 = arith.constant 1.500000e+00 : f32
    %12 = vector.broadcast %cst_6 : f32 to vector<8x128xf32>
    %13 = arith.mulf %11, %12 : vector<8x128xf32>
    %14 = math.floor %13 : vector<8x128xf32>
    %15 = arith.subf %13, %14 : vector<8x128xf32>
    %16 = arith.mulf %15, %15 : vector<8x128xf32>
    %17 = arith.mulf %16, %15 : vector<8x128xf32>
    %cst_7 = arith.constant 0.166666672 : f32
    %18 = vector.broadcast %cst_7 : f32 to vector<8x128xf32>
    %19 = arith.mulf %17, %18 : vector<8x128xf32>
    %cst_8 = arith.constant -3.000000e+00 : f32
    %20 = vector.broadcast %cst_8 : f32 to vector<8x128xf32>
    %21 = arith.mulf %20, %17 : vector<8x128xf32>
    %cst_9 = arith.constant 3.000000e+00 : f32
    %22 = vector.broadcast %cst_9 : f32 to vector<8x128xf32>
    %23 = arith.mulf %22, %16 : vector<8x128xf32>
    %24 = arith.addf %21, %23 : vector<8x128xf32>
    %cst_10 = arith.constant 3.000000e+00 : f32
    %25 = vector.broadcast %cst_10 : f32 to vector<8x128xf32>
    %26 = arith.mulf %25, %15 : vector<8x128xf32>
    %27 = arith.addf %24, %26 : vector<8x128xf32>
    %cst_11 = arith.constant 1.000000e+00 : f32
    %28 = vector.broadcast %cst_11 : f32 to vector<8x128xf32>
    %29 = arith.addf %27, %28 : vector<8x128xf32>
    %cst_12 = arith.constant 0.166666672 : f32
    %30 = vector.broadcast %cst_12 : f32 to vector<8x128xf32>
    %31 = arith.mulf %29, %30 : vector<8x128xf32>
    %cst_13 = arith.constant 3.000000e+00 : f32
    %32 = vector.broadcast %cst_13 : f32 to vector<8x128xf32>
    %33 = arith.mulf %32, %17 : vector<8x128xf32>
    %cst_14 = arith.constant 6.000000e+00 : f32
    %34 = vector.broadcast %cst_14 : f32 to vector<8x128xf32>
    %35 = arith.mulf %34, %16 : vector<8x128xf32>
    %36 = arith.subf %33, %35 : vector<8x128xf32>
    %cst_15 = arith.constant 4.000000e+00 : f32
    %37 = vector.broadcast %cst_15 : f32 to vector<8x128xf32>
    %38 = arith.addf %36, %37 : vector<8x128xf32>
    %cst_16 = arith.constant 0.166666672 : f32
    %39 = vector.broadcast %cst_16 : f32 to vector<8x128xf32>
    %40 = arith.mulf %38, %39 : vector<8x128xf32>
    %cst_17 = arith.constant 0.000000e+00 : f32
    %41 = vector.broadcast %cst_17 : f32 to vector<8x128xf32>
    %42 = arith.subf %41, %17 : vector<8x128xf32>
    %cst_18 = arith.constant 3.000000e+00 : f32
    %43 = vector.broadcast %cst_18 : f32 to vector<8x128xf32>
    %44 = arith.mulf %43, %16 : vector<8x128xf32>
    %45 = arith.addf %42, %44 : vector<8x128xf32>
    %cst_19 = arith.constant 3.000000e+00 : f32
    %46 = vector.broadcast %cst_19 : f32 to vector<8x128xf32>
    %47 = arith.mulf %46, %15 : vector<8x128xf32>
    %48 = arith.subf %45, %47 : vector<8x128xf32>
    %cst_20 = arith.constant 1.000000e+00 : f32
    %49 = vector.broadcast %cst_20 : f32 to vector<8x128xf32>
    %50 = arith.addf %48, %49 : vector<8x128xf32>
    %cst_21 = arith.constant 0.166666672 : f32
    %51 = vector.broadcast %cst_21 : f32 to vector<8x128xf32>
    %52 = arith.mulf %50, %51 : vector<8x128xf32>
    %cst_22 = arith.constant 0.000000e+00 : f32
    %53 = vector.broadcast %cst_22 : f32 to vector<8x128xf32>
    %54 = arith.cmpf oeq, %14, %53 : vector<8x128xf32>
    %cst_23 = arith.constant 1.000000e+00 : f32
    %55 = vector.broadcast %cst_23 : f32 to vector<8x128xf32>
    %56 = arith.cmpf oeq, %14, %55 : vector<8x128xf32>
    %cst_24 = arith.constant 2.000000e+00 : f32
    %57 = vector.broadcast %cst_24 : f32 to vector<8x128xf32>
    %58 = arith.cmpf oeq, %14, %57 : vector<8x128xf32>
    %cst_25 = arith.constant 3.000000e+00 : f32
    %59 = vector.broadcast %cst_25 : f32 to vector<8x128xf32>
    %60 = arith.cmpf oeq, %14, %59 : vector<8x128xf32>
    %cst_26 = arith.constant 4.000000e+00 : f32
    %61 = vector.broadcast %cst_26 : f32 to vector<8x128xf32>
    %62 = arith.cmpf oeq, %14, %61 : vector<8x128xf32>
    %cst_27 = arith.constant 5.000000e+00 : f32
    %63 = vector.broadcast %cst_27 : f32 to vector<8x128xf32>
    %64 = arith.cmpf oeq, %14, %63 : vector<8x128xf32>
    %cst_28 = arith.constant 6.000000e+00 : f32
    %65 = vector.broadcast %cst_28 : f32 to vector<8x128xf32>
    %66 = arith.cmpf oeq, %14, %65 : vector<8x128xf32>
    %cst_29 = arith.constant 7.000000e+00 : f32
    %67 = vector.broadcast %cst_29 : f32 to vector<8x128xf32>
    %68 = arith.cmpf oeq, %14, %67 : vector<8x128xf32>
    %cst_30 = arith.constant 8.000000e+00 : f32
    %69 = vector.broadcast %cst_30 : f32 to vector<8x128xf32>
    %70 = arith.cmpf oeq, %14, %69 : vector<8x128xf32>
    %cst_31 = arith.constant 0.000000e+00 : f32
    %71 = vector.broadcast %cst_31 : f32 to vector<8x128xf32>
    %72 = arith.select %54, %19, %71 : vector<8x128xi1>, vector<8x128xf32>
    %73 = arith.select %56, %31, %72 : vector<8x128xi1>, vector<8x128xf32>
    %74 = arith.select %58, %40, %73 : vector<8x128xi1>, vector<8x128xf32>
    %75 = arith.select %60, %52, %74 : vector<8x128xi1>, vector<8x128xf32>
    %76 = arith.select %56, %19, %71 : vector<8x128xi1>, vector<8x128xf32>
    %77 = arith.select %58, %31, %76 : vector<8x128xi1>, vector<8x128xf32>
    %78 = arith.select %60, %40, %77 : vector<8x128xi1>, vector<8x128xf32>
    %79 = arith.select %62, %52, %78 : vector<8x128xi1>, vector<8x128xf32>
    %80 = arith.select %58, %19, %71 : vector<8x128xi1>, vector<8x128xf32>
    %81 = arith.select %60, %31, %80 : vector<8x128xi1>, vector<8x128xf32>
    %82 = arith.select %62, %40, %81 : vector<8x128xi1>, vector<8x128xf32>
    %83 = arith.select %64, %52, %82 : vector<8x128xi1>, vector<8x128xf32>
    %84 = arith.select %60, %19, %71 : vector<8x128xi1>, vector<8x128xf32>
    %85 = arith.select %62, %31, %84 : vector<8x128xi1>, vector<8x128xf32>
    %86 = arith.select %64, %40, %85 : vector<8x128xi1>, vector<8x128xf32>
    %87 = arith.select %66, %52, %86 : vector<8x128xi1>, vector<8x128xf32>
    %88 = arith.select %62, %19, %71 : vector<8x128xi1>, vector<8x128xf32>
    %89 = arith.select %64, %31, %88 : vector<8x128xi1>, vector<8x128xf32>
    %90 = arith.select %66, %40, %89 : vector<8x128xi1>, vector<8x128xf32>
    %91 = arith.select %68, %52, %90 : vector<8x128xi1>, vector<8x128xf32>
    %92 = arith.select %64, %19, %71 : vector<8x128xi1>, vector<8x128xf32>
    %93 = arith.select %66, %31, %92 : vector<8x128xi1>, vector<8x128xf32>
    %94 = arith.select %68, %40, %93 : vector<8x128xi1>, vector<8x128xf32>
    %95 = arith.select %70, %52, %94 : vector<8x128xi1>, vector<8x128xf32>
    %96 = tpu.concatenate %9, %75, %79, %83, %87, %91, %95 in 0 : vector<8x128xf32>, vector<8x128xf32>, vector<8x128xf32>, vector<8x128xf32>, vector<8x128xf32>, vector<8x128xf32>, vector<8x128xf32> -> vector<56x128xf32>
    %cst_32 = arith.constant dense<0.000000e+00> : vector<32x128xf32>
    %97 = tpu.matmul %1, %96, %cst_32 {dimension_numbers = #tpu.dot_dimension_numbers<[1], [0], [0], [1], [0, 0, 1, 1], [], []>} : vector<32x56xf32>, vector<56x128xf32>, vector<32x128xf32> -> vector<32x128xf32>
    %c0_33 = arith.constant 0 : index
    %c0_34 = arith.constant 0 : index
    %98 = vector.load %arg3[%c0_33, %c0_34] : memref<1x224xf32, #tpu.memory_space<vmem>>, vector<1x224xf32>
    %cst_35 = arith.constant 5.000000e-01 : f32
    %99 = vector.broadcast %cst_35 : f32 to vector<32x128xf32>
    %100 = arith.mulf %99, %97 : vector<32x128xf32>
    %101 = math.tanh %100 : vector<32x128xf32>
    %cst_36 = arith.constant 5.000000e-01 : f32
    %102 = vector.broadcast %cst_36 : f32 to vector<32x128xf32>
    %103 = arith.mulf %102, %101 : vector<32x128xf32>
    %cst_37 = arith.constant 5.000000e-01 : f32
    %104 = vector.broadcast %cst_37 : f32 to vector<32x128xf32>
    %105 = arith.addf %103, %104 : vector<32x128xf32>
    %106 = arith.mulf %97, %105 : vector<32x128xf32>
    %cst_38 = arith.constant -3.000000e+00 : f32
    %107 = vector.broadcast %cst_38 : f32 to vector<32x128xf32>
    %108 = arith.subf %97, %107 : vector<32x128xf32>
    %cst_39 = arith.constant 1.500000e+00 : f32
    %109 = vector.broadcast %cst_39 : f32 to vector<32x128xf32>
    %110 = arith.mulf %108, %109 : vector<32x128xf32>
    %111 = math.floor %110 : vector<32x128xf32>
    %112 = arith.subf %110, %111 : vector<32x128xf32>
    %113 = arith.mulf %112, %112 : vector<32x128xf32>
    %114 = arith.mulf %113, %112 : vector<32x128xf32>
    %cst_40 = arith.constant 0.166666672 : f32
    %115 = vector.broadcast %cst_40 : f32 to vector<32x128xf32>
    %116 = arith.mulf %114, %115 : vector<32x128xf32>
    %cst_41 = arith.constant -3.000000e+00 : f32
    %117 = vector.broadcast %cst_41 : f32 to vector<32x128xf32>
    %118 = arith.mulf %117, %114 : vector<32x128xf32>
    %cst_42 = arith.constant 3.000000e+00 : f32
    %119 = vector.broadcast %cst_42 : f32 to vector<32x128xf32>
    %120 = arith.mulf %119, %113 : vector<32x128xf32>
    %121 = arith.addf %118, %120 : vector<32x128xf32>
    %cst_43 = arith.constant 3.000000e+00 : f32
    %122 = vector.broadcast %cst_43 : f32 to vector<32x128xf32>
    %123 = arith.mulf %122, %112 : vector<32x128xf32>
    %124 = arith.addf %121, %123 : vector<32x128xf32>
    %cst_44 = arith.constant 1.000000e+00 : f32
    %125 = vector.broadcast %cst_44 : f32 to vector<32x128xf32>
    %126 = arith.addf %124, %125 : vector<32x128xf32>
    %cst_45 = arith.constant 0.166666672 : f32
    %127 = vector.broadcast %cst_45 : f32 to vector<32x128xf32>
    %128 = arith.mulf %126, %127 : vector<32x128xf32>
    %cst_46 = arith.constant 3.000000e+00 : f32
    %129 = vector.broadcast %cst_46 : f32 to vector<32x128xf32>
    %130 = arith.mulf %129, %114 : vector<32x128xf32>
    %cst_47 = arith.constant 6.000000e+00 : f32
    %131 = vector.broadcast %cst_47 : f32 to vector<32x128xf32>
    %132 = arith.mulf %131, %113 : vector<32x128xf32>
    %133 = arith.subf %130, %132 : vector<32x128xf32>
    %cst_48 = arith.constant 4.000000e+00 : f32
    %134 = vector.broadcast %cst_48 : f32 to vector<32x128xf32>
    %135 = arith.addf %133, %134 : vector<32x128xf32>
    %cst_49 = arith.constant 0.166666672 : f32
    %136 = vector.broadcast %cst_49 : f32 to vector<32x128xf32>
    %137 = arith.mulf %135, %136 : vector<32x128xf32>
    %cst_50 = arith.constant 0.000000e+00 : f32
    %138 = vector.broadcast %cst_50 : f32 to vector<32x128xf32>
    %139 = arith.subf %138, %114 : vector<32x128xf32>
    %cst_51 = arith.constant 3.000000e+00 : f32
    %140 = vector.broadcast %cst_51 : f32 to vector<32x128xf32>
    %141 = arith.mulf %140, %113 : vector<32x128xf32>
    %142 = arith.addf %139, %141 : vector<32x128xf32>
    %cst_52 = arith.constant 3.000000e+00 : f32
    %143 = vector.broadcast %cst_52 : f32 to vector<32x128xf32>
    %144 = arith.mulf %143, %112 : vector<32x128xf32>
    %145 = arith.subf %142, %144 : vector<32x128xf32>
    %cst_53 = arith.constant 1.000000e+00 : f32
    %146 = vector.broadcast %cst_53 : f32 to vector<32x128xf32>
    %147 = arith.addf %145, %146 : vector<32x128xf32>
    %cst_54 = arith.constant 0.166666672 : f32
    %148 = vector.broadcast %cst_54 : f32 to vector<32x128xf32>
    %149 = arith.mulf %147, %148 : vector<32x128xf32>
    %cst_55 = arith.constant 0.000000e+00 : f32
    %150 = vector.broadcast %cst_55 : f32 to vector<32x128xf32>
    %151 = arith.cmpf oeq, %111, %150 : vector<32x128xf32>
    %cst_56 = arith.constant 1.000000e+00 : f32
    %152 = vector.broadcast %cst_56 : f32 to vector<32x128xf32>
    %153 = arith.cmpf oeq, %111, %152 : vector<32x128xf32>
    %cst_57 = arith.constant 2.000000e+00 : f32
    %154 = vector.broadcast %cst_57 : f32 to vector<32x128xf32>
    %155 = arith.cmpf oeq, %111, %154 : vector<32x128xf32>
    %cst_58 = arith.constant 3.000000e+00 : f32
    %156 = vector.broadcast %cst_58 : f32 to vector<32x128xf32>
    %157 = arith.cmpf oeq, %111, %156 : vector<32x128xf32>
    %cst_59 = arith.constant 4.000000e+00 : f32
    %158 = vector.broadcast %cst_59 : f32 to vector<32x128xf32>
    %159 = arith.cmpf oeq, %111, %158 : vector<32x128xf32>
    %cst_60 = arith.constant 5.000000e+00 : f32
    %160 = vector.broadcast %cst_60 : f32 to vector<32x128xf32>
    %161 = arith.cmpf oeq, %111, %160 : vector<32x128xf32>
    %cst_61 = arith.constant 6.000000e+00 : f32
    %162 = vector.broadcast %cst_61 : f32 to vector<32x128xf32>
    %163 = arith.cmpf oeq, %111, %162 : vector<32x128xf32>
    %cst_62 = arith.constant 7.000000e+00 : f32
    %164 = vector.broadcast %cst_62 : f32 to vector<32x128xf32>
    %165 = arith.cmpf oeq, %111, %164 : vector<32x128xf32>
    %cst_63 = arith.constant 8.000000e+00 : f32
    %166 = vector.broadcast %cst_63 : f32 to vector<32x128xf32>
    %167 = arith.cmpf oeq, %111, %166 : vector<32x128xf32>
    %cst_64 = arith.constant 0.000000e+00 : f32
    %168 = vector.broadcast %cst_64 : f32 to vector<32x128xf32>
    %169 = arith.select %151, %116, %168 : vector<32x128xi1>, vector<32x128xf32>
    %170 = arith.select %153, %128, %169 : vector<32x128xi1>, vector<32x128xf32>
    %171 = arith.select %155, %137, %170 : vector<32x128xi1>, vector<32x128xf32>
    %172 = arith.select %157, %149, %171 : vector<32x128xi1>, vector<32x128xf32>
    %173 = arith.select %153, %116, %168 : vector<32x128xi1>, vector<32x128xf32>
    %174 = arith.select %155, %128, %173 : vector<32x128xi1>, vector<32x128xf32>
    %175 = arith.select %157, %137, %174 : vector<32x128xi1>, vector<32x128xf32>
    %176 = arith.select %159, %149, %175 : vector<32x128xi1>, vector<32x128xf32>
    %177 = arith.select %155, %116, %168 : vector<32x128xi1>, vector<32x128xf32>
    %178 = arith.select %157, %128, %177 : vector<32x128xi1>, vector<32x128xf32>
    %179 = arith.select %159, %137, %178 : vector<32x128xi1>, vector<32x128xf32>
    %180 = arith.select %161, %149, %179 : vector<32x128xi1>, vector<32x128xf32>
    %181 = arith.select %157, %116, %168 : vector<32x128xi1>, vector<32x128xf32>
    %182 = arith.select %159, %128, %181 : vector<32x128xi1>, vector<32x128xf32>
    %183 = arith.select %161, %137, %182 : vector<32x128xi1>, vector<32x128xf32>
    %184 = arith.select %163, %149, %183 : vector<32x128xi1>, vector<32x128xf32>
    %185 = arith.select %159, %116, %168 : vector<32x128xi1>, vector<32x128xf32>
    %186 = arith.select %161, %128, %185 : vector<32x128xi1>, vector<32x128xf32>
    %187 = arith.select %163, %137, %186 : vector<32x128xi1>, vector<32x128xf32>
    %188 = arith.select %165, %149, %187 : vector<32x128xi1>, vector<32x128xf32>
    %189 = arith.select %161, %116, %168 : vector<32x128xi1>, vector<32x128xf32>
    %190 = arith.select %163, %128, %189 : vector<32x128xi1>, vector<32x128xf32>
    %191 = arith.select %165, %137, %190 : vector<32x128xi1>, vector<32x128xf32>
    %192 = arith.select %167, %149, %191 : vector<32x128xi1>, vector<32x128xf32>
    %193 = tpu.concatenate %106, %172, %176, %180, %184, %188, %192 in 0 : vector<32x128xf32>, vector<32x128xf32>, vector<32x128xf32>, vector<32x128xf32>, vector<32x128xf32>, vector<32x128xf32>, vector<32x128xf32> -> vector<224x128xf32>
    %cst_65 = arith.constant dense<0.000000e+00> : vector<1x128xf32>
    %194 = tpu.matmul %98, %193, %cst_65 {dimension_numbers = #tpu.dot_dimension_numbers<[1], [0], [0], [1], [0, 0, 1, 1], [], []>} : vector<1x224xf32>, vector<224x128xf32>, vector<1x128xf32> -> vector<1x128xf32>
    %cst_66 = arith.constant 5.000000e-01 : f32
    %195 = vector.broadcast %cst_66 : f32 to vector<1x128xf32>
    %196 = arith.mulf %195, %194 : vector<1x128xf32>
    %197 = math.tanh %196 : vector<1x128xf32>
    %cst_67 = arith.constant 5.000000e-01 : f32
    %198 = vector.broadcast %cst_67 : f32 to vector<1x128xf32>
    %199 = arith.mulf %198, %197 : vector<1x128xf32>
    %cst_68 = arith.constant 5.000000e-01 : f32
    %200 = vector.broadcast %cst_68 : f32 to vector<1x128xf32>
    %201 = arith.addf %199, %200 : vector<1x128xf32>
    %c0_69 = arith.constant 0 : index
    %c0_70 = arith.constant 0 : index
    %202 = vector.load %arg4[%c0_69, %c0_70] : memref<1x128xf32, #tpu.memory_space<vmem>>, vector<1x128xf32>
    tpu.vector_store %arg4[%c0_69, %c0_70], %201 {strides = array<i32>} : memref<1x128xf32, #tpu.memory_space<vmem>>, vector<1x128xf32>,
    return
  }
  func.func @transform_0(%arg0: i32) -> (i32, i32) {
    %c0_i32 = arith.constant 0 : i32
    %c0_i32_0 = arith.constant 0 : i32
    return %c0_i32, %arg0 : i32, i32
  }
  func.func @transform_1(%arg0: i32) -> (i32, i32) {
    %c0_i32 = arith.constant 0 : i32
    %c0_i32_0 = arith.constant 0 : i32
    %c0_i32_1 = arith.constant 0 : i32
    return %c0_i32, %c0_i32_0 : i32, i32
  }
  func.func @transform_2(%arg0: i32) -> (i32, i32) {
    %c0_i32 = arith.constant 0 : i32
    %c0_i32_0 = arith.constant 0 : i32
    %c0_i32_1 = arith.constant 0 : i32
    return %c0_i32, %c0_i32_0 : i32, i32
  }
  func.func @transform_3(%arg0: i32) -> (i32, i32) {
    %c0_i32 = arith.constant 0 : i32
    %c0_i32_0 = arith.constant 0 : i32
    return %c0_i32, %arg0 : i32, i32
  }
}

</mosaic_0001>

<bundles_post_ra>
// kernel: tpu_custom_call.1
= control target key start
LH: loop header
LB: loop body
LE: loop exit
PB: predicated region body
PF: predicated region fallthrough
CT: control target
= control target key end

     0   :  { %8 = vsyncpa [#allocation3], 0  ;;  %s1864_s0 = inlined_call_operand.hbm [shape: f32[8,256], index: 0, kind: input, shape index: {}]   ;;  %s1865_s1 = inlined_call_operand.hbm [shape: f32[32,56], index: 1, kind: input, shape index: {}]   ;;  %s1866_s2 = inlined_call_operand.hbm [shape: f32[1,224], index: 2, kind: input, shape index: {}]   ;;  %s1867_s3 = inlined_call_operand.hbm [shape: f32[1,256], index: 3, kind: output, shape index: {}]  }
   0x1   :  { %10 = vsyncpa [#allocation3 + $0x1], 0 }
   0x2   :  { %11 = vsyncpa [#allocation6], 0 }
   0x3   :  { %12 = vsyncpa [#allocation4], 0 }
   0x4   :  { %14 = vsyncpa [#allocation4 + $0x1], 0  ;;  %s1188_s12 = smov 0   ;;  %s1190_s13 = smov 0  }
   0x5   :  { %s1192_s14 = smov 0   ;;  %s1194_s15 = smov 0  }
   0x6 LB: > { %s1209_s16 = sadd.s32 4294967295, %s1159_s15   ;;  %s812_s17 = sadd.s32 4294967294, %s1159_s15   ;;  %s1159_s15 = sphi %s1194_s15, %s1887_s15   ;;  %s1155_s14 = sphi %s1192_s14, %s1886_s14   ;;  %s1151_s13 = sphi %s1190_s13, %s1885_s13   ;;  %s1147_s12 = sphi %s1188_s12, %s1884_s12  }
   0x7   : > { %p40_p0 = scmp.ne.s32.totalorder %s1151_s13, %s1147_s12  ;;  %p1868_p1 = scmp.eq.s32.totalorder %s1209_s16, 0 }
   0x8   : > { %p112_p3 = scmp.eq.s32.totalorder %s812_s17, 1  ;;  %p813_p5 = scmp.ge.s32.totalorder %s1159_s15, 1 }
   0x9   : > { %p1218_p4 = por %p1868_p1, %p40_p0  ;;  %p119_p7 = scmp.lt.s32.totalorder %s1159_s15, 3 }
   0xa   : > { %p1223_p6 = por %p112_p3, %p40_p0  ;;  %s1161_s21 = smov [#allocation5]  }
   0xb   : > { %s1871_s18 = scalar_select %p1218_p4, 1, 0 }
   0xc   : > { %s1872_s19 = scalar_select %p1223_p6, 1, 0 }
   0xd   : > { %p1228_p8 = pnand %p813_p5, %p119_p7  ;;  %s131_s22 = sshll.u32 %s1161_s21, 4  ;;  %s1232_s22 = int_to_ptr.vmem [resolvable:$true] %s131_s22 }
   0xe   : > { %s1162_s24 = smov [#allocation7]   ;;  %s1003_s28 = scalar_lea.hbm %s1865_s1, 512 }
   0xf   : > { %p933_p9 = pneg %p1228_p8  ;;  %s145_s25 = sshll.u32 %s1162_s24, 4  ;;  %s1243_s25 = int_to_ptr.vmem [resolvable:$true] %s145_s25 }
  0x10   : > { %p1004_p12 = scmp.ne.s32.totalorder %s1865_s1, %s1003_s28  ;;  %p1010_p5 = scmp.lt.u32.totalorder %s1003_s28, %s1865_s1 }
  0x11   : > { %p1239_p11 = pnand %p933_p9, %p1868_p1 }
  0x13   : > { %p1005_p13 = pneg %p1239_p11 }
  0x15   : > { %p1006_p0 = pnand %p1005_p13, %p1004_p12 }
  0x17   : > { %p1007_p3 = pneg %p1006_p0 }
  0x19   : > { %p1012_p7 = pnand %p1010_p5, %p1007_p3 }
  0x1b   : > { %1015 = shalt.err (!%p1012_p7)
}
  0x1c   : > { %s1016_s6 = scalar_lea.vmem %s1232_s22, 512  ;;  %p1024_p2 = scmp.lt.s32.totalorder %s1232_s22, %s1232_s22 }
  0x1d   : > { %p1017_p9 = scmp.ne.s32.totalorder %s1232_s22, %s1016_s6  ;;  %p1025_p12 = scmp.lt.s32.totalorder %s1016_s6, %s1016_s6 }
  0x1f   : > { %p1019_p10 = pnand %p1017_p9, %p1005_p13  ;;  %p1026_p0 = por %p1025_p12, %p1024_p2 }
  0x21   : > { %p1020_p1 = pneg %p1019_p10 }
  0x23   : > { %p1027_p6 = pnand %p1026_p0, %p1020_p1 }
  0x25   : > { %1030 = shalt.err (!%p1027_p6)
}
  0x26   : > { %s1163_s7 = smov 128   ;;  %s1164_s8 = smov 8  }
  0x27   : > { %936 = dma.hbm_to_vmem [thread:$0]  (!%p1239_p11), %s1865_s1, 512, %s1232_s22, [#allocation6], %s1163_s7, %s1163_s7, %s1164_s8  }
  0x28   : > { %s1031_s21 = scalar_lea.hbm %s1866_s2, 32 }
  0x29   : > { %p1032_p2 = scmp.ne.s32.totalorder %s1866_s2, %s1031_s21  ;;  %p1038_p10 = scmp.lt.u32.totalorder %s1031_s21, %s1866_s2 }
  0x2b   : > { %p1034_p1 = pnand %p1032_p2, %p1005_p13 }
  0x2d   : > { %p1035_p6 = pneg %p1034_p1 }
  0x2f   : > { %p1040_p3 = pnand %p1038_p10, %p1035_p6 }
  0x31   : > { %1043 = shalt.err (!%p1040_p3)
}
  0x32   : > { %s1044_s22 = scalar_lea.vmem %s1243_s25, 32  ;;  %p1052_p12 = scmp.lt.s32.totalorder %s1243_s25, %s1243_s25 }
  0x33   : > { %p1045_p5 = scmp.ne.s32.totalorder %s1243_s25, %s1044_s22  ;;  %p1053_p0 = scmp.lt.s32.totalorder %s1044_s22, %s1044_s22 }
  0x35   : > { %p1047_p7 = pnand %p1045_p5, %p1005_p13  ;;  %p1054_p2 = por %p1053_p0, %p1052_p12 }
  0x37   : > { %p1048_p9 = pneg %p1047_p7 }
  0x39   : > { %p1055_p1 = pnand %p1054_p2, %p1048_p9 }
  0x3b   : > { %1058 = shalt.err (!%p1055_p1)
}
  0x3c   : > { %939 = dma.hbm_to_vmem [thread:$0]  (!%p1239_p11), %s1866_s2, 32, %s1243_s25, [#allocation6]  }
  0x3d   : > { %s1298_s4 = sadd.s32 1, %s1159_s15   ;;  %s27_s23 = sadd.s32 1, %s1155_s14 }
  0x3e   : > { %s24_s5 = ssub.s32 %s1159_s15, %s1298_s4  ;;  %p34_p13 = scmp.ne.s32.totalorder %s1155_s14, %s1151_s13 }
  0x3f   : > { %p25_p6 = scmp.eq.s32.totalorder %s24_s5, 0  ;;  %p35_p10 = scmp.eq.s32.totalorder %s1159_s15, 0 }
  0x40   : > { %p1875_p3 = scmp.eq.s32.totalorder %s1209_s16, 1  ;;  %p950_p7 = scmp.lt.s32.totalorder %s1159_s15, 2 }
  0x41   : > { %s1314_s7 = scalar_select %p25_p6, %s1155_s14, %s27_s23  }
  0x42   : > { %p1308_p5 = por %p1875_p3, %p34_p13  ;;  %p36_p9 = por %p35_p10, %p34_p13 }
  0x43   : > { %s156_s8 = sand.u32 1, %s1155_s14   ;;  %s818_s25 = sshll.u32 %s1159_s15, 7 }
  0x44   : > { %s1876_s6 = scalar_select %p1308_p5, 1, 0 }
  0x45   : > { %s817_s9 = sshll.u32 %s156_s8, 3  ;;  %s1321_s17 = scalar_lea.hbm %s1864_s0, %s818_s25 }
  0x46   : > { %s160_s21 = scalar_lea.vmem [#allocation2], %s817_s9  ;;  %p1325_p11 = pnand %p950_p7, %p36_p9 }
  0x47   : > { %s167_s24 = sshll.u32 %s160_s21, 4  ;;  %s157_s27 = scalar_lea.sflag [#allocation3], %s156_s8  ;;  %s1323_s24 = int_to_ptr.vmem [resolvable:$true] %s167_s24 }
  0x48   : > { %s1059_s28 = scalar_lea.hbm %s1321_s17, 128  ;;  %p1061_p0 = pneg %p1325_p11 }
  0x49   : > { %p1060_p12 = scmp.ne.s32.totalorder %s1321_s17, %s1059_s28  ;;  %s1064_s30 = scalar_lea.hbm %s1864_s0, 256 }
  0x4a   : > { %p1065_p13 = scmp.lt.u32.totalorder %s1321_s17, %s1864_s0  ;;  %p1066_p6 = scmp.lt.u32.totalorder %s1064_s30, %s1059_s28 }
  0x4b   : > { %p1062_p2 = pnand %p1061_p0, %p1060_p12  ;;  %p1068_p3 = scmp.lt.u32.totalorder %s1059_s28, %s1321_s17 }
  0x4c   : > { %p1067_p10 = por %p1066_p6, %p1065_p13 }
  0x4d   : > { %p1063_p1 = pneg %p1062_p2 }
  0x4e   : > { %p1069_p7 = por %p1068_p3, %p1067_p10 }
  0x50   : > { %p1070_p9 = pnand %p1069_p7, %p1063_p1 }
  0x52   : > { %1073 = shalt.err (!%p1070_p9)
}
  0x53   : > { %s1074_s8 = scalar_lea.vmem %s1323_s24, 128  ;;  %s1165_s9 = smov [#allocation2]  }
  0x54   : > { %p1075_p12 = scmp.ne.s32.totalorder %s1323_s24, %s1074_s8  ;;  %s1079_s25 = sshll.u32 %s1165_s9, 4  ;;  %s1080_s25 = int_to_ptr.vmem [resolvable:$false] %s1079_s25 }
  0x55   : > { %s1081_s10 = scalar_lea.vmem %s1080_s25, 256  ;;  %p1082_p4 = scmp.lt.s32.totalorder %s1323_s24, %s1080_s25 }
  0x56   : > { %p1077_p2 = pnand %p1075_p12, %p1061_p0  ;;  %p1083_p13 = scmp.lt.s32.totalorder %s1081_s10, %s1074_s8 }
  0x58   : > { %p1078_p5 = pneg %p1077_p2  ;;  %p1084_p6 = por %p1083_p13, %p1082_p4 }
  0x5a   : > { %p1085_p10 = pnand %p1084_p6, %p1078_p5 }
  0x5c   : > { %1088 = shalt.err (!%p1085_p10)
}
  0x5d   : > { %943 = dma.hbm_to_vmem [thread:$0]  (!%p1325_p11), %s1321_s17, 128, %s1323_s24, %s157_s27  }
  0x5e   : > { %176 = sbr.rel (%p1228_p8) target bundleno = 692 (0x2b4), region = 32  ;;  %s1357_s11 = sand.u32 (!%p1228_p8), 1, %s1151_s13  }
  0x5f   : > { %s820_s21 = sshll.u32 (!%p1228_p8), %s1357_s11, 3  ;;  %s179_s28 = scalar_lea.sflag (!%p1228_p8), [#allocation3], %s1357_s11 }
  0x60   : > { %s182_s22 = scalar_lea.vmem (!%p1228_p8), [#allocation2], %s820_s21  ;;  %p1878_p4 = scmp.ne.s32.totalorder (!%p1228_p8), %s1871_s18, 0 }
  0x65   : > { %1134 = dma.done.wait (%p1878_p4), %s179_s28, 128  }
  0x66   : > { %1136 = vsyncadd (%p1878_p4), %s179_s28, 4294967168  ;;  %p1879_p5 = scmp.eq.s32.totalorder %s1209_s16, 0 }
  0x68   : > { %1138 = dma.done.wait (%p1879_p5), [#allocation6], 544   ;;  %p1880_p11 = pmov %p1879_p5 }
  0x69   : > { %vm279_vm0 = vcmask 457728   ;;  %v212_v0 = vld [vmem:[%s182_s22] sm:$0xff]  ;;  %v213_v1 = vld [vmem:[#allocation5] sm:$0xff]  ;;  %v214_v58 = vld [vmem:[#allocation5 + $0x8] sm:$0xff]  ;;  %v1166_v61 = vmov 0.0|0.0   ;;  %v627_v62 = vlaneseq  ;;  %vm636_vm10 = vcmask 785408  }
  0x6a   : > { %1140 = vsyncadd (%p1880_p11), [#allocation6], 4294966752  ;;  %v217_v2 = vmul.f32 0.5, %v212_v0  ;;  %v823_v3 = vadd.f32 3.0, %v212_v0  ;;  %861 = vmatprep.mubr.msk.f32.mxu0 %vm279_vm0, %v213_v1  ;;  %v215_v59 = vld [vmem:[#allocation5 + $0x10] sm:$0xff]  ;;  %v216_v60 = vld [vmem:[#allocation5 + $0x18] sm:$0xff]  ;;  %879 = vmatprep.subr.bf16.mxu1 %v1166_v61 }
  0x6b   : > { %v628_v63 = vshrl.u32 %v627_v62, 7  ;;  %s833_s18 = sshll.u32 %s1209_s16, 4  ;;  %s211_s20 = scalar_lea.vmem [#allocation8], %s1357_s11 }
  0x6c   : > { %991 = vtanh.f32 %v217_v2  ;;  %v223_v4 = vmul.f32 1.5, %v823_v3  ;;  %s727_s17 = sshll.u32 %s211_s20, 4  ;;  %s1820_s27 = scalar_lea.hbm %s1867_s3, %s833_s18  ;;  %s1822_s17 = int_to_ptr.vmem [resolvable:$true] %s727_s17 }
  0x6d   : > { %v629_v1 = vsub.s32 0, %v628_v63  ;;  %v633_v2 = vsub.s32 1, %v628_v63  ;;  %s715_s29 = scalar_lea.sflag [#allocation4], %s1357_s11  ;;  %s1089_s30 = scalar_lea.vmem %s1822_s17, 16 }
  0x6e   : > { %v1370_v5 = vfloor.f32 %v223_v4  ;;  %p1090_p8 = scmp.ne.s32.totalorder %s1822_s17, %s1089_s30  ;;  %p1881_p0 = scmp.ne.s32.totalorder %s1876_s6, 0 }
  0x6f   : > { %s1167_s16 = smov [#allocation8]  }
  0x70   : > { %v225_v6 = vsub.f32 %v223_v4, %v1370_v5  ;;  %vm246_vm1 = vcmp.eq.f32.partialorder %v1370_v5, 0.0  ;;  %vm247_vm2 = vcmp.eq.f32.partialorder %v1370_v5, 1.0  ;;  %vm248_vm3 = vcmp.eq.f32.partialorder %v1370_v5, 2.0  ;;  %p1091_p1 = pnand %p1090_p8, %p1881_p0  ;;  %s1093_s23 = sshll.u32 %s1167_s16, 4  ;;  %s1094_s23 = int_to_ptr.vmem [resolvable:$false] %s1093_s23 }
  0x71   : > { %vm249_vm4 = vcmp.eq.f32.partialorder %v1370_v5, 3.0  ;;  %vm250_vm5 = vcmp.eq.f32.partialorder %v1370_v5, 4.0  ;;  %vm251_vm6 = vcmp.eq.f32.partialorder %v1370_v5, 5.0  ;;  %vm252_vm7 = vcmp.eq.f32.partialorder %v1370_v5, 6.0  ;;  %s1095_s5 = scalar_lea.vmem %s1094_s23, 32  ;;  %p1096_p7 = scmp.lt.s32.totalorder %s1822_s17, %s1094_s23 }
  0x72   : > { %v226_v7 = vmul.f32 %v225_v6, %v225_v6  ;;  %v232_v13 = vmul.f32 3.0, %v225_v6  ;;  %vm253_vm8 = vcmp.eq.f32.partialorder %v1370_v5, 7.0  ;;  %vm254_vm9 = vcmp.eq.f32.partialorder %v1370_v5, 8.0  ;;  %p1092_p3 = pneg %p1091_p1  ;;  %p1097_p9 = scmp.lt.s32.totalorder %s1095_s5, %s1089_s30 }
  0x74   : > { %v227_v8 = vmul.f32 %v226_v7, %v225_v6  ;;  %v230_v9 = vmul.f32 3.0, %v226_v7  ;;  %v237_v10 = vmul.f32 6.0, %v226_v7  ;;  %p1098_p12 = por %p1097_p9, %p1096_p7 }
  0x76   : > { %v992_v11 = vpop.eup %991  ;;  %v229_v12 = vmul.f32 -3.0, %v227_v8  ;;  %v236_v14 = vmul.f32 3.0, %v227_v8  ;;  %v241_v15 = vsub.f32 0.0, %v227_v8  ;;  %v228_v17 = vmul.f32 0.16666667, %v227_v8  ;;  %p1099_p2 = pnand %p1098_p12, %p1092_p3 }
  0x77   : > { %v219_v16 = vmul.f32 0.5, %v992_v11 }
  0x78   : > { %v231_v18 = vadd.f32 %v230_v9, %v229_v12  ;;  %v238_v19 = vsub.f32 %v236_v14, %v237_v10  ;;  %v242_v20 = vadd.f32 %v241_v15, %v230_v9  ;;  %v255_v27 = vsel %vm246_vm1, %v228_v17, 0.0 }
  0x79   : > { %v220_v24 = vadd.f32 0.5, %v219_v16  ;;  %v259_v29 = vsel %vm247_vm2, %v228_v17, 0.0  ;;  %v263_v30 = vsel %vm248_vm3, %v228_v17, 0.0  ;;  %v267_v31 = vsel %vm249_vm4, %v228_v17, 0.0 }
  0x7a   : > { %v233_v21 = vadd.f32 %v232_v13, %v231_v18  ;;  %v239_v22 = vadd.f32 4.0, %v238_v19  ;;  %v243_v23 = vsub.f32 %v242_v20, %v232_v13  ;;  %v271_v35 = vsel %vm250_vm5, %v228_v17, 0.0 }
  0x7b   : > { %v221_v34 = vmul.f32 %v220_v24, %v212_v0  ;;  %v275_v50 = vsel %vm251_vm6, %v228_v17, 0.0  ;;  %v377_v0 = vld [vmem:[#allocation7] sm:$0x3] }
  0x7c   : > { %v234_v25 = vadd.f32 1.0, %v233_v21  ;;  %v244_v26 = vadd.f32 1.0, %v243_v23  ;;  %v240_v28 = vmul.f32 0.16666667, %v239_v22  ;;  %v1418_v3 = vrot.slane %v377_v0, %v629_v1 }
  0x7d   : > { %v634_v4 = vrot.slane %v377_v0, %v633_v2 }
  0x7e   : > { %v235_v32 = vmul.f32 0.16666667, %v234_v25  ;;  %v245_v33 = vmul.f32 0.16666667, %v244_v26 }
  0x7f   : > { %832 = vmatprep.mubr.msk.f32.mxu1 %vm636_vm10, %v634_v4 }
  0x80   : > { %v256_v36 = vsel %vm247_vm2, %v235_v32, %v255_v27  ;;  %v260_v37 = vsel %vm248_vm3, %v235_v32, %v259_v29  ;;  %v264_v38 = vsel %vm249_vm4, %v235_v32, %v263_v30  ;;  %v268_v39 = vsel %vm250_vm5, %v235_v32, %v267_v31 }
  0x81   : > { %v257_v40 = vsel %vm248_vm3, %v240_v28, %v256_v36  ;;  %v261_v41 = vsel %vm249_vm4, %v240_v28, %v260_v37  ;;  %v265_v42 = vsel %vm250_vm5, %v240_v28, %v264_v38  ;;  %v269_v43 = vsel %vm251_vm6, %v240_v28, %v268_v39 }
  0x82   : > { %v258_v44 = vsel %vm249_vm4, %v245_v33, %v257_v40  ;;  %v262_v45 = vsel %vm250_vm5, %v245_v33, %v261_v41  ;;  %v266_v46 = vsel %vm251_vm6, %v245_v33, %v265_v42  ;;  %v272_v49 = vsel %vm251_vm6, %v235_v32, %v271_v35 }
  0x83   : > { %v867_v47 = vpack.c.bf16 %v258_v44, %v221_v34  ;;  %v871_v48 = vpack.c.bf16 %v266_v46, %v262_v45  ;;  %v270_v51 = vsel %vm252_vm7, %v245_v33, %v269_v43  ;;  %v273_v52 = vsel %vm252_vm7, %v240_v28, %v272_v49 }
  0x84   : > { %v274_v53 = vsel %vm253_vm8, %v245_v33, %v273_v52  ;;  %v276_v54 = vsel %vm252_vm7, %v235_v32, %v275_v50 }
  0x85   : > { %868 = vmatprep.subr.bf16.mxu0 %v867_v47  ;;  %v875_v55 = vpack.c.bf16 %v274_v53, %v270_v51  ;;  %v277_v56 = vsel %vm253_vm8, %v240_v28, %v276_v54 }
  0x86   : > { %870 = vmatpush3.bf16.msra.mxu0 %v867_v47  ;;  %v278_v57 = vsel %vm254_vm9, %v245_v33, %v277_v56 }
  0x87   : > { %872 = vmatprep.subr.bf16.mxu0 %v871_v48 }
  0x8a   : > { %874 = vmatpush3.bf16.msra.mxu0 %v871_v48 }
  0x8b   : > { %876 = vmatprep.subr.bf16.mxu0 %v875_v55 }
  0x8e   : > { %878 = vmatpush3.bf16.msra.mxu0 %v875_v55 }
  0x8f   : > { %859 = vmatprep.subr.mxu0 %v278_v57 }
  0x92   : > { %860 = vmatpush3.msra.mxu0 %v278_v57 }
  0x93   : > { %862 = vmatmul.mubr.msk.f32.vlgmr.msra.gmra.mrb[0].mxu0 %vm279_vm0, %v214_v58 }
  0x94   : > { %864 = vmatprep.mubr.msk.f32.mxu0 %vm279_vm0, %v215_v59 }
  0x97   : > { %865 = vmatmul.mubr.msk.f32.gmra.mrb[2].mxu0 %vm279_vm0, %v216_v60 }
 0x166   : > { %v1420_v5 = vpop.f32.mrb[0].mxu0 }
 0x167   : > { %v829_v6 = vadd.f32 3.0, %v1420_v5  ;;  %v1423_v7 = vpop.f32.mrb[1].mxu0  ;;  %v379_v10 = vmul.f32 0.5, %v1420_v5 }
 0x168   : > { %v828_v8 = vadd.f32 3.0, %v1423_v7  ;;  %v378_v14 = vmul.f32 0.5, %v1423_v7 }
 0x169   : > { %v403_v9 = vmul.f32 1.5, %v829_v6 }
 0x16a   : > { %v402_v11 = vmul.f32 1.5, %v828_v8  ;;  %v1427_v12 = vpop.f32.mrb[2].mxu0 }
 0x16b   : > { %v1429_v13 = vfloor.f32 %v403_v9  ;;  %v381_v15 = vmul.f32 0.5, %v1427_v12  ;;  %v831_v16 = vadd.f32 3.0, %v1427_v12  ;;  %v1434_v17 = vpop.f32.mrb[3].mxu0 }
 0x16c   : > { %v1436_v18 = vfloor.f32 %v402_v11  ;;  %v380_v19 = vmul.f32 0.5, %v1434_v17  ;;  %v830_v20 = vadd.f32 3.0, %v1434_v17 }
 0x16d   : > { %v411_v21 = vsub.f32 %v403_v9, %v1429_v13  ;;  %993 = vtanh.f32 %v381_v15  ;;  %v405_v22 = vmul.f32 1.5, %v831_v16  ;;  %vm495_vm12 = vcmp.eq.f32.partialorder %v1429_v13, 0.0 }
 0x16e   : > { %995 = vtanh.f32 %v379_v10  ;;  %v410_v23 = vsub.f32 %v402_v11, %v1436_v18  ;;  %v404_v24 = vmul.f32 1.5, %v830_v20  ;;  %vm494_vm11 = vcmp.eq.f32.partialorder %v1436_v18, 0.0 }
 0x16f   : > { %v415_v25 = vmul.f32 %v411_v21, %v411_v21  ;;  %997 = vtanh.f32 %v378_v14  ;;  %v1442_v26 = vfloor.f32 %v405_v22  ;;  %v439_v27 = vmul.f32 3.0, %v411_v21 }
 0x170   : > { %v414_v28 = vmul.f32 %v410_v23, %v410_v23  ;;  %999 = vtanh.f32 %v380_v19  ;;  %v1444_v29 = vfloor.f32 %v404_v24  ;;  %v438_v32 = vmul.f32 3.0, %v410_v23 }
 0x171   : > { %v419_v30 = vmul.f32 %v415_v25, %v411_v21  ;;  %v431_v31 = vmul.f32 3.0, %v415_v25  ;;  %v413_v33 = vsub.f32 %v405_v22, %v1442_v26  ;;  %v459_v34 = vmul.f32 6.0, %v415_v25 }
 0x172   : > { %v418_v35 = vmul.f32 %v414_v28, %v410_v23  ;;  %v430_v36 = vmul.f32 3.0, %v414_v28  ;;  %v458_v37 = vmul.f32 6.0, %v414_v28  ;;  %v412_v41 = vsub.f32 %v404_v24, %v1444_v29 }
 0x173   : > { %v427_v38 = vmul.f32 -3.0, %v419_v30  ;;  %v455_v39 = vmul.f32 3.0, %v419_v30  ;;  %v475_v40 = vsub.f32 0.0, %v419_v30  ;;  %v1448_v42 = vmul.f32 0.16666667, %v419_v30 }
 0x174   : > { %v426_v43 = vmul.f32 -3.0, %v418_v35  ;;  %v454_v44 = vmul.f32 3.0, %v418_v35  ;;  %v474_v45 = vsub.f32 0.0, %v418_v35  ;;  %v417_v49 = vmul.f32 %v413_v33, %v413_v33 }
 0x175   : > { %v435_v46 = vadd.f32 %v431_v31, %v427_v38  ;;  %v463_v47 = vsub.f32 %v455_v39, %v459_v34  ;;  %v479_v48 = vadd.f32 %v475_v40, %v431_v31  ;;  %v1450_v50 = vmul.f32 0.16666667, %v418_v35 }
 0x176   : > { %v434_v51 = vadd.f32 %v430_v36, %v426_v43  ;;  %v462_v52 = vsub.f32 %v454_v44, %v458_v37  ;;  %v478_v53 = vadd.f32 %v474_v45, %v430_v36  ;;  %v421_v58 = vmul.f32 %v417_v49, %v413_v33 }
 0x177   : > { %v994_v54 = vpop.eup %993  ;;  %v443_v55 = vadd.f32 %v439_v27, %v435_v46  ;;  %v467_v56 = vadd.f32 4.0, %v463_v47  ;;  %v483_v57 = vsub.f32 %v479_v48, %v439_v27  ;;  %v433_v21 = vmul.f32 3.0, %v417_v49 }
 0x178   : > { %v996_v59 = vpop.eup %995  ;;  %v442_v60 = vadd.f32 %v438_v32, %v434_v51  ;;  %v466_v62 = vadd.f32 4.0, %v462_v52  ;;  %v482_v63 = vsub.f32 %v478_v53, %v438_v32  ;;  %v389_v0 = vmul.f32 0.5, %v994_v54 }
 0x179   : > { %v998_v1 = vpop.eup %997  ;;  %v447_v2 = vadd.f32 1.0, %v443_v55  ;;  %v1452_v4 = vmul.f32 0.16666667, %v467_v56  ;;  %v487_v6 = vadd.f32 1.0, %v483_v57  ;;  %v1454_v8 = vmul.f32 0.16666667, %v421_v58 }
 0x17a   : > { %v1000_v9 = vpop.eup %999  ;;  %v446_v10 = vadd.f32 1.0, %v442_v60  ;;  %v1456_v11 = vmul.f32 0.16666667, %v466_v62  ;;  %v486_v14 = vadd.f32 1.0, %v482_v63  ;;  %v393_v15 = vadd.f32 0.5, %v389_v0 }
 0x17b   : > { %v1458_v16 = vmul.f32 0.16666667, %v447_v2  ;;  %v1460_v19 = vmul.f32 0.16666667, %v487_v6  ;;  %v429_v20 = vmul.f32 -3.0, %v421_v58  ;;  %v441_v24 = vmul.f32 3.0, %v413_v33 }
 0x17c   : > { %v1462_v22 = vmul.f32 0.16666667, %v446_v10  ;;  %v1464_v23 = vmul.f32 0.16666667, %v486_v14  ;;  %v457_v25 = vmul.f32 3.0, %v421_v58  ;;  %v461_v28 = vmul.f32 6.0, %v417_v49 }
 0x17d   : > { %v437_v27 = vadd.f32 %v433_v21, %v429_v20  ;;  %v477_v30 = vsub.f32 0.0, %v421_v58  ;;  %v388_v31 = vmul.f32 0.5, %v1000_v9  ;;  %v1467_v32 = vmul.f32 %v1427_v12, %v393_v15 }
 0x17e   : > { %v416_v34 = vmul.f32 %v412_v41, %v412_v41  ;;  %v440_v35 = vmul.f32 3.0, %v412_v41  ;;  %v386_v36 = vmul.f32 0.5, %v998_v1  ;;  %v465_v38 = vsub.f32 %v457_v25, %v461_v28 }
 0x17f   : > { %v445_v37 = vadd.f32 %v441_v24, %v437_v27  ;;  %v481_v39 = vadd.f32 %v477_v30, %v433_v21  ;;  %v392_v40 = vadd.f32 0.5, %v388_v31  ;;  %v387_v44 = vmul.f32 0.5, %v996_v59 }
 0x180   : > { %v420_v33 = vmul.f32 %v416_v34, %v412_v41  ;;  %v432_v43 = vmul.f32 3.0, %v416_v34  ;;  %v390_v45 = vadd.f32 0.5, %v386_v36  ;;  %vm498_vm13 = vcmp.eq.f32.partialorder %v1436_v18, 1.0 }
 0x181   : > { %vm499_vm14 = vcmp.eq.f32.partialorder %v1429_v13, 1.0  ;;  %v449_v12 = vadd.f32 1.0, %v445_v37  ;;  %v469_v46 = vadd.f32 4.0, %v465_v38  ;;  %v485_v47 = vsub.f32 %v481_v39, %v441_v24 }
 0x182   : > { %v396_v48 = vmul.f32 %v392_v40, %v1434_v17  ;;  %v428_v49 = vmul.f32 -3.0, %v420_v33  ;;  %v456_v51 = vmul.f32 3.0, %v420_v33  ;;  %v460_v52 = vmul.f32 6.0, %v416_v34 }
 0x183   : > { %v476_v53 = vsub.f32 0.0, %v420_v33  ;;  %v1474_v54 = vmul.f32 0.16666667, %v449_v12  ;;  %v489_v55 = vadd.f32 1.0, %v485_v47  ;;  %v1476_v41 = vmul.f32 0.16666667, %v420_v33 }
 0x184   : > { %v883_v56 = vpack.c.bf16 %v1467_v32, %v396_v48  ;;  %v436_v57 = vadd.f32 %v432_v43, %v428_v49  ;;  %v464_v58 = vsub.f32 %v456_v51, %v460_v52  ;;  %v391_v60 = vadd.f32 0.5, %v387_v44 }
 0x185   : > { %v480_v59 = vadd.f32 %v476_v53, %v432_v43  ;;  %v1479_v62 = vmul.f32 0.16666667, %v469_v46  ;;  %v1481_v63 = vmul.f32 0.16666667, %v489_v55  ;;  %v394_v17 = vmul.f32 %v390_v45, %v1423_v7 }
 0x186   : > { %vm502_vm15 = vcmp.eq.f32.partialorder %v1436_v18, 2.0  ;;  %v444_v0 = vadd.f32 %v440_v35, %v436_v57  ;;  %v468_v1 = vadd.f32 4.0, %v464_v58  ;;  %v395_v6 = vmul.f32 %v1420_v5, %v391_v60 }
 0x187   : > { %v484_v2 = vsub.f32 %v480_v59, %v440_v35  ;;  %vm503_vm0 = vcmp.eq.f32.partialorder %v1429_v13, 2.0  ;;  %vm506_vm1 = vcmp.eq.f32.partialorder %v1436_v18, 3.0  ;;  %vm507_vm2 = vcmp.eq.f32.partialorder %v1429_v13, 3.0 }
 0x188   : > { %v530_v9 = vsel %vm494_vm11, %v1450_v50, 0.0  ;;  %v448_v10 = vadd.f32 1.0, %v444_v0  ;;  %v880_v7 = vpack.c.bf16 %v395_v6, %v394_v17  ;;  %v531_v15 = vsel %vm495_vm12, %v1448_v42, 0.0 }
 0x189   : > { %v488_v14 = vadd.f32 1.0, %v484_v2  ;;  %v1495_v20 = vmul.f32 0.16666667, %v468_v1  ;;  %v534_v5 = vsel %vm498_vm13, %v1462_v22, %v530_v9  ;;  %v535_v21 = vsel %vm499_vm14, %v1458_v16, %v531_v15 }
 0x18a   : > { %vm496_vm3 = vcmp.eq.f32.partialorder %v1444_v29, 0.0  ;;  %v1504_v24 = vmul.f32 0.16666667, %v448_v10  ;;  %881 = vmatpush1.bf16.msra.mxu1 %v880_v7  ;;  %v538_v25 = vsel %vm502_vm15, %v1456_v11, %v534_v5  ;;  %v539_v27 = vsel %vm503_vm0, %v1452_v4, %v535_v21 }
 0x18b   : > { %vm497_vm4 = vcmp.eq.f32.partialorder %v1442_v26, 0.0  ;;  %v1513_v28 = vmul.f32 0.16666667, %v488_v14  ;;  %882 = vmatprep.subr.bf16.mxu1 %v1166_v61  ;;  %v542_v30 = vsel %vm506_vm1, %v1464_v23, %v538_v25  ;;  %v543_v31 = vsel %vm507_vm2, %v1460_v19, %v539_v27 }
 0x18c   : > { %vm500_vm5 = vcmp.eq.f32.partialorder %v1444_v29, 1.0  ;;  %v886_v32 = vpack.c.bf16 %v543_v31, %v542_v30  ;;  %vm501_vm6 = vcmp.eq.f32.partialorder %v1442_v26, 1.0  ;;  %vm504_vm7 = vcmp.eq.f32.partialorder %v1444_v29, 2.0 }
 0x18d   : > { %vm505_vm8 = vcmp.eq.f32.partialorder %v1442_v26, 2.0  ;;  %vm508_vm9 = vcmp.eq.f32.partialorder %v1444_v29, 3.0  ;;  %vm509_vm10 = vcmp.eq.f32.partialorder %v1442_v26, 3.0  ;;  %v532_v34 = vsel %vm496_vm3, %v1476_v41, 0.0 }
 0x18e   : > { %v533_v35 = vsel %vm497_vm4, %v1454_v8, 0.0  ;;  %884 = vmatpush1.bf16.msra.mxu1 %v883_v56  ;;  %v536_v36 = vsel %vm500_vm5, %v1504_v24, %v532_v34  ;;  %vm510_vm11 = vcmp.eq.f32.partialorder %v1436_v18, 4.0  ;;  %v546_v38 = vsel %vm498_vm13, %v1450_v50, 0.0 }
 0x18f   : > { %v537_v37 = vsel %vm501_vm6, %v1474_v54, %v533_v35  ;;  %885 = vmatprep.subr.bf16.mxu1 %v1166_v61  ;;  %v540_v39 = vsel %vm504_vm7, %v1495_v20, %v536_v36  ;;  %v547_v33 = vsel %vm499_vm14, %v1448_v42, 0.0  ;;  %v550_v43 = vsel %vm502_vm15, %v1462_v22, %v546_v38 }
 0x190   : > { %v541_v40 = vsel %vm505_vm8, %v1479_v62, %v537_v37  ;;  %v544_v44 = vsel %vm508_vm9, %v1513_v28, %v540_v39  ;;  %v551_v12 = vsel %vm503_vm0, %v1458_v16, %v547_v33  ;;  %v554_v46 = vsel %vm506_vm1, %v1456_v11, %v550_v43 }
 0x191   : > { %v545_v45 = vsel %vm509_vm10, %v1481_v63, %v541_v40  ;;  %vm511_vm12 = vcmp.eq.f32.partialorder %v1429_v13, 4.0  ;;  %v555_v48 = vsel %vm507_vm2, %v1452_v4, %v551_v12  ;;  %v558_v49 = vsel %vm510_vm11, %v1464_v23, %v554_v46 }
 0x192   : > { %v889_v47 = vpack.c.bf16 %v545_v45, %v544_v44  ;;  %887 = vmatpush1.bf16.msra.mxu1 %v886_v32  ;;  %v559_v51 = vsel %vm511_vm12, %v1460_v19, %v555_v48  ;;  %v548_v52 = vsel %vm500_vm5, %v1476_v41, 0.0  ;;  %v549_v53 = vsel %vm501_vm6, %v1454_v8, 0.0 }
 0x193   : > { %888 = vmatprep.subr.bf16.mxu1 %v1166_v61  ;;  %v892_v55 = vpack.c.bf16 %v559_v51, %v558_v49  ;;  %vm512_vm13 = vcmp.eq.f32.partialorder %v1444_v29, 4.0  ;;  %v552_v56 = vsel %vm504_vm7, %v1504_v24, %v548_v52  ;;  %v553_v57 = vsel %vm505_vm8, %v1474_v54, %v549_v53 }
 0x194   : > { %vm513_vm14 = vcmp.eq.f32.partialorder %v1442_v26, 4.0  ;;  %v556_v58 = vsel %vm508_vm9, %v1495_v20, %v552_v56  ;;  %v557_v59 = vsel %vm509_vm10, %v1479_v62, %v553_v57  ;;  %v562_v60 = vsel %vm502_vm15, %v1450_v50, 0.0 }
 0x195   : > { %v560_v17 = vsel %vm512_vm13, %v1513_v28, %v556_v58  ;;  %v561_v0 = vsel %vm513_vm14, %v1481_v63, %v557_v59  ;;  %v563_v1 = vsel %vm503_vm0, %v1448_v42, 0.0  ;;  %v566_v2 = vsel %vm506_vm1, %v1462_v22, %v562_v60 }
 0x196   : > { %890 = vmatpush1.bf16.msra.mxu1 %v889_v47  ;;  %v895_v6 = vpack.c.bf16 %v561_v0, %v560_v17  ;;  %vm514_vm15 = vcmp.eq.f32.partialorder %v1436_v18, 5.0  ;;  %v567_v9 = vsel %vm507_vm2, %v1458_v16, %v563_v1  ;;  %v570_v10 = vsel %vm510_vm11, %v1456_v11, %v566_v2 }
 0x197   : > { %891 = vmatprep.subr.bf16.mxu1 %v1166_v61  ;;  %vm515_vm0 = vcmp.eq.f32.partialorder %v1429_v13, 5.0  ;;  %v571_v14 = vsel %vm511_vm12, %v1452_v4, %v567_v9  ;;  %v574_v7 = vsel %vm514_vm15, %v1464_v23, %v570_v10  ;;  %v564_v15 = vsel %vm504_vm7, %v1476_v41, 0.0 }
 0x198   : > { %v575_v5 = vsel %vm515_vm0, %v1460_v19, %v571_v14  ;;  %vm516_vm3 = vcmp.eq.f32.partialorder %v1444_v29, 5.0  ;;  %v565_v21 = vsel %vm505_vm8, %v1454_v8, 0.0  ;;  %v568_v25 = vsel %vm508_vm9, %v1504_v24, %v564_v15 }
 0x199   : > { %v898_v27 = vpack.c.bf16 %v575_v5, %v574_v7  ;;  %vm517_vm4 = vcmp.eq.f32.partialorder %v1442_v26, 5.0  ;;  %v569_v30 = vsel %vm509_vm10, %v1474_v54, %v565_v21  ;;  %v572_v31 = vsel %vm512_vm13, %v1495_v20, %v568_v25 }
 0x19a   : > { %893 = vmatpush1.bf16.msra.mxu1 %v892_v55  ;;  %v573_v32 = vsel %vm513_vm14, %v1479_v62, %v569_v30  ;;  %v576_v34 = vsel %vm516_vm3, %v1513_v28, %v572_v31  ;;  %v578_v35 = vsel %vm506_vm1, %v1450_v50, 0.0  ;;  %v579_v36 = vsel %vm507_vm2, %v1448_v42, 0.0 }
 0x19b   : > { %894 = vmatprep.subr.bf16.mxu1 %v1166_v61  ;;  %v577_v37 = vsel %vm517_vm4, %v1481_v63, %v573_v32  ;;  %vm518_vm5 = vcmp.eq.f32.partialorder %v1436_v18, 6.0  ;;  %v582_v38 = vsel %vm510_vm11, %v1462_v22, %v578_v35  ;;  %v583_v39 = vsel %vm511_vm12, %v1458_v16, %v579_v36 }
 0x19c   : > { %v901_v40 = vpack.c.bf16 %v577_v37, %v576_v34  ;;  %vm519_vm1 = vcmp.eq.f32.partialorder %v1429_v13, 6.0  ;;  %v586_v33 = vsel %vm514_vm15, %v1456_v11, %v582_v38  ;;  %v587_v43 = vsel %vm515_vm0, %v1452_v4, %v583_v39 }
 0x19d   : > { %v590_v44 = vsel %vm518_vm5, %v1464_v23, %v586_v33  ;;  %v591_v45 = vsel %vm519_vm1, %v1460_v19, %v587_v43  ;;  %v580_v12 = vsel %vm508_vm9, %v1476_v41, 0.0  ;;  %v581_v46 = vsel %vm509_vm10, %v1454_v8, 0.0 }
 0x19e   : > { %896 = vmatpush1.bf16.msra.mxu1 %v895_v6  ;;  %v904_v47 = vpack.c.bf16 %v591_v45, %v590_v44  ;;  %vm520_vm2 = vcmp.eq.f32.partialorder %v1444_v29, 6.0  ;;  %v584_v48 = vsel %vm512_vm13, %v1504_v24, %v580_v12  ;;  %v585_v49 = vsel %vm513_vm14, %v1474_v54, %v581_v46 }
 0x19f   : > { %897 = vmatprep.subr.bf16.mxu1 %v1166_v61  ;;  %vm521_vm6 = vcmp.eq.f32.partialorder %v1442_v26, 6.0  ;;  %v588_v51 = vsel %vm516_vm3, %v1495_v20, %v584_v48  ;;  %v589_v52 = vsel %vm517_vm4, %v1479_v62, %v585_v49  ;;  %v594_v53 = vsel %vm510_vm11, %v1450_v50, 0.0 }
 0x1a0   : > { %v592_v55 = vsel %vm520_vm2, %v1513_v28, %v588_v51  ;;  %v593_v56 = vsel %vm521_vm6, %v1481_v63, %v589_v52  ;;  %v595_v57 = vsel %vm511_vm12, %v1448_v42, 0.0  ;;  %v598_v58 = vsel %vm514_vm15, %v1462_v22, %v594_v53 }
 0x1a1   : > { %v907_v59 = vpack.c.bf16 %v593_v56, %v592_v55  ;;  %vm522_vm7 = vcmp.eq.f32.partialorder %v1436_v18, 7.0  ;;  %v599_v60 = vsel %vm515_vm0, %v1458_v16, %v595_v57  ;;  %v602_v17 = vsel %vm518_vm5, %v1456_v11, %v598_v58 }
 0x1a2   : > { %899 = vmatpush1.bf16.msra.mxu1 %v898_v27  ;;  %vm523_vm8 = vcmp.eq.f32.partialorder %v1429_v13, 7.0  ;;  %v603_v0 = vsel %vm519_vm1, %v1452_v4, %v599_v60  ;;  %v606_v1 = vsel %vm522_vm7, %v1464_v23, %v602_v17  ;;  %v596_v2 = vsel %vm512_vm13, %v1476_v41, 0.0 }
 0x1a3   : > { %900 = vmatprep.subr.bf16.mxu1 %v1166_v61  ;;  %v607_v6 = vsel %vm523_vm8, %v1460_v19, %v603_v0  ;;  %vm524_vm9 = vcmp.eq.f32.partialorder %v1444_v29, 7.0  ;;  %v597_v9 = vsel %vm513_vm14, %v1454_v8, 0.0  ;;  %v600_v10 = vsel %vm516_vm3, %v1504_v24, %v596_v2 }
 0x1a4   : > { %v910_v14 = vpack.c.bf16 %v607_v6, %v606_v1  ;;  %vm525_vm10 = vcmp.eq.f32.partialorder %v1442_v26, 7.0  ;;  %v601_v7 = vsel %vm517_vm4, %v1474_v54, %v597_v9  ;;  %v604_v15 = vsel %vm520_vm2, %v1495_v20, %v600_v10 }
 0x1a5   : > { %v605_v5 = vsel %vm521_vm6, %v1479_v62, %v601_v7  ;;  %v608_v21 = vsel %vm524_vm9, %v1513_v28, %v604_v15  ;;  %v610_v25 = vsel %vm514_vm15, %v1450_v50, 0.0  ;;  %v611_v27 = vsel %vm515_vm0, %v1448_v42, 0.0 }
 0x1a6   : > { %902 = vmatpush1.bf16.msra.mxu1 %v901_v40  ;;  %v609_v30 = vsel %vm525_vm10, %v1481_v63, %v605_v5  ;;  %vm526_vm11 = vcmp.eq.f32.partialorder %v1436_v18, 8.0  ;;  %v614_v31 = vsel %vm518_vm5, %v1462_v22, %v610_v25  ;;  %v615_v32 = vsel %vm519_vm1, %v1458_v16, %v611_v27 }
 0x1a7   : > { %903 = vmatprep.subr.bf16.mxu1 %v1166_v61  ;;  %v913_v50 = vpack.c.bf16 %v609_v30, %v608_v21  ;;  %vm527_vm12 = vcmp.eq.f32.partialorder %v1429_v13, 8.0  ;;  %v618_v42 = vsel %vm522_vm7, %v1456_v11, %v614_v31  ;;  %v619_v34 = vsel %vm523_vm8, %v1452_v4, %v615_v32 }
 0x1a8   : > { %v622_v35 = vsel %vm526_vm11, %v1464_v23, %v618_v42  ;;  %v623_v22 = vsel %vm527_vm12, %v1460_v19, %v619_v34  ;;  %v612_v16 = vsel %vm516_vm3, %v1476_v41, 0.0  ;;  %v613_v36 = vsel %vm517_vm4, %v1454_v8, 0.0 }
 0x1a9   : > { %v916_v37 = vpack.c.bf16 %v623_v22, %v622_v35  ;;  %v616_v18 = vsel %vm520_vm2, %v1504_v24, %v612_v16  ;;  %v617_v13 = vsel %vm521_vm6, %v1474_v54, %v613_v36  ;;  %vm528_vm13 = vcmp.eq.f32.partialorder %v1444_v29, 8.0 }
 0x1aa   : > { %905 = vmatpush1.bf16.msra.mxu1 %v904_v47  ;;  %vm529_vm14 = vcmp.eq.f32.partialorder %v1442_v26, 8.0  ;;  %v620_v4 = vsel %vm524_vm9, %v1495_v20, %v616_v18  ;;  %v621_v8 = vsel %vm525_vm10, %v1479_v62, %v617_v13 }
 0x1ab   : > { %906 = vmatprep.subr.bf16.mxu1 %v1166_v61  ;;  %v624_v11 = vsel %vm528_vm13, %v1513_v28, %v620_v4  ;;  %v625_v19 = vsel %vm529_vm14, %v1481_v63, %v621_v8 }
 0x1ac   : > { %v919_v23 = vpack.c.bf16 %v625_v19, %v624_v11 }
 0x1ae   : > { %908 = vmatpush1.bf16.msra.mxu1 %v907_v59 }
 0x1af   : > { %909 = vmatprep.subr.bf16.mxu1 %v1166_v61 }
 0x1b2   : > { %911 = vmatpush1.bf16.msra.mxu1 %v910_v14 }
 0x1b3   : > { %912 = vmatprep.subr.bf16.mxu1 %v1166_v61 }
 0x1b6   : > { %914 = vmatpush1.bf16.msra.mxu1 %v913_v50 }
 0x1b7   : > { %915 = vmatprep.subr.bf16.mxu1 %v1166_v61 }
 0x1ba   : > { %917 = vmatpush1.bf16.msra.mxu1 %v916_v37 }
 0x1bb   : > { %918 = vmatprep.subr.bf16.mxu1 %v1166_v61 }
 0x1be   : > { %920 = vmatpush1.bf16.msra.mxu1 %v919_v23 }
 0x1c1   : > { %704 = vmatmul.mubr.f32.vlgmr.msra.gmra.mrb[0].mxu1 %v1418_v3 }
 0x294   : > { %v705_v26 = vpop.f32.mrb[0].mxu1 }
 0x295   : > { %v709_v29 = vmul.f32 0.5, %v705_v26  ;;  %v707_v54 = vpop.f32.mrb[1].mxu1 }
 0x297   : > { %1001 = vtanh.f32 %v709_v29 }
 0x2a1   : > { %v1002_v41 = vpop.eup %1001 }
 0x2a2   : > { %v711_v62 = vmul.f32 0.5, %v1002_v41 }
 0x2a4   : > { %v712_v63 = vadd.f32 0.5, %v711_v62 }
 0x2a6   : > { %713 = vst [vmem:[%s211_s20] sm:$0x1] %v712_v63 }
 0x2a7   : > { %1102 = shalt.err (!%p1099_p2)
}
 0x2a8   : > { %s1103_s8 = scalar_lea.hbm %s1820_s27, 16  ;;  %s1107_s10 = scalar_lea.hbm %s1867_s3, 32 }
 0x2a9   : > { %p1104_p13 = scmp.ne.s32.totalorder %s1820_s27, %s1103_s8  ;;  %p1108_p4 = scmp.lt.u32.totalorder %s1820_s27, %s1867_s3 }
 0x2aa   : > { %p1109_p5 = scmp.lt.u32.totalorder %s1107_s10, %s1103_s8  ;;  %p1111_p8 = scmp.lt.u32.totalorder %s1103_s8, %s1820_s27 }
 0x2ab   : > { %p1105_p6 = pnand %p1104_p13, %p1881_p0 }
 0x2ac   : > { %p1110_p11 = por %p1109_p5, %p1108_p4 }
 0x2ad   : > { %p1106_p10 = pneg %p1105_p6 }
 0x2ae   : > { %p1112_p1 = por %p1111_p8, %p1110_p11 }
 0x2b0   : > { %p1113_p3 = pnand %p1112_p1, %p1106_p10 }
 0x2b2   : > { %1116 = shalt.err (!%p1113_p3)
}
 0x2b3   : > { %931 = dma.vmem_to_hbm [thread:$0]  (%p1881_p0), %s1822_s17, 16, %s1820_s27, %s715_s29  }
 0x2b4 PF: > { %s739_s28 = sand.u32 1, %s1147_s12   ;;  %p1882_p7 = scmp.ne.s32.totalorder %s1872_s19, 0 }
 0x2b5   : > { %p1883_p9 = scmp.ge.s32.totalorder %s1159_s15, 2  ;;  %s740_s22 = scalar_lea.sflag [#allocation4], %s739_s28 }
 0x2b7   : > { %p945_p12 = pnand %p1883_p9, %p1882_p7 }
 0x2b9   : > { %1142 = dma.done.wait (!%p945_p12), %s740_s22, 16  }
 0x2ba   : > { %1144 = vsyncadd (!%p945_p12), %s740_s22, 4294967280  ;;  %p17_p2 = scmp.ge.s32.totalorder %s1298_s4, 4   ;;  %s1884_s12 = smov %s1151_s13 }
 0x2bb   : > { %s1885_s13 = smov %s1155_s14  ;;  %s1886_s14 = smov %s1314_s7 }
 0x2bc   : > { %s1887_s15 = smov %s1298_s4  ;;  %19 = sbr.rel (!%p17_p2) target bundleno = 6 (0x6), region = 85 }
 0x2c3   :  { %744 = vsyncpa [#allocation3], 1 }
 0x2c4   :  { %746 = vsyncpa [#allocation3 + $0x1], 1 }
 0x2c5   :  { %747 = vsyncpa [#allocation6], 1 }
 0x2c6   :  { %748 = vsyncpa [#allocation4], 1 }
 0x2c7   :  { %750 = vsyncpa [#allocation4 + $0x1], 1 }

</bundles_post_ra>
